<compile_context>
chip_gen: v5e
topology: v5e:2x2
jax: 0.10.0
libtpu: 0.0.40
codegen_flags: <defaults>
</compile_context>

<pallas_src>
import math

import jax
import jax.numpy as jnp
from jax.experimental import pallas as pl
from jax.experimental.pallas import tpu as pltpu


# Packed-bias slot offsets (all multiples of 128 lanes).
_B1_OFF, _B2_OFF, _B3_OFF, _B4_OFF, _B5_OFF = 0, 256, 384, 512, 640
_BIAS_LEN = 768  # 6 lane-tiles of 128


def dino_mlp_kernel(x_ref,
                    w1_ref, w2_ref, w3_ref, w4_ref, w5_ref,
                    b_ref,
                    o_ref):
    """Fused MLP for one batch tile: all matmuls on the MXU (bf16 in, f32 acc)."""
    # Layer 1: 6 -> 256, ReLU  (Dropout(0.2) is identity at inference)
    h = jnp.dot(x_ref[...].astype(jnp.bfloat16), w1_ref[...],
                preferred_element_type=jnp.float32)
    h = jnp.maximum(h + b_ref[:, _B1_OFF:_B1_OFF + 256], 0.0)

    # Layer 2: 256 -> 128, ReLU
    h = jnp.dot(h.astype(jnp.bfloat16), w2_ref[...],
                preferred_element_type=jnp.float32)
    h = jnp.maximum(h + b_ref[:, _B2_OFF:_B2_OFF + 128], 0.0)

    # Layer 3: 128 -> 64, ReLU
    h = jnp.dot(h.astype(jnp.bfloat16), w3_ref[...],
                preferred_element_type=jnp.float32)
    h = jnp.maximum(h + b_ref[:, _B3_OFF:_B3_OFF + 64], 0.0)

    # Layer 4: 64 -> 32, ReLU
    h = jnp.dot(h.astype(jnp.bfloat16), w4_ref[...],
                preferred_element_type=jnp.float32)
    h = jnp.maximum(h + b_ref[:, _B4_OFF:_B4_OFF + 32], 0.0)

    # Layer 5: 32 -> 3, padded to 128 output columns for a lane-dense store.
    out = jnp.dot(h.astype(jnp.bfloat16), w5_ref[...],
                  preferred_element_type=jnp.float32)
    out = out + b_ref[:, _B5_OFF:_B5_OFF + 128]
    o_ref[...] = out.astype(o_ref.dtype)


def _round_up(n, m):
    return ((n + m - 1) // m) * m


def prepare_params(params):
    """Convert (W[in,out] f32, b[1,out] f32) pairs into the kernel format.

    Returns (weights, bias_packed):
      weights: 5 bf16 arrays [in, out], layer-5 zero-padded to [32, 128].
      bias_packed: one (1, 768) f32 buffer with lane-aligned slots.
    """
    (w1, b1), (w2, b2), (w3, b3), (w4, b4), (w5, b5) = params

    w5p = jnp.zeros((32, 128), jnp.float32).at[:, :3].set(w5)
    weights = tuple(w.astype(jnp.bfloat16) for w in (w1, w2, w3, w4, w5p))

    bias = jnp.zeros((1, _BIAS_LEN), jnp.float32)
    bias = bias.at[:, _B1_OFF:_B1_OFF + 256].set(b1)
    bias = bias.at[:, _B2_OFF:_B2_OFF + 128].set(b2)
    bias = bias.at[:, _B3_OFF:_B3_OFF + 64].set(b3)
    bias = bias.at[:, _B4_OFF:_B4_OFF + 32].set(b4)
    bias = bias.at[:, _B5_OFF:_B5_OFF + 3].set(b5)
    return weights, bias


def dino_model_forward(x, kernel_params, *, tile_b=512):
    """Run the fused DinoModel MLP as a single batch-tiled pallas_call.

    x: [B, 6] float32
    kernel_params: output of prepare_params()
    returns: [B, 3] float32
    """
    weights, bias = kernel_params
    B = x.shape[0]

    # Tile the batch (multiple of 8 sublanes); pad B up to a whole number of tiles.
    tb = min(tile_b, _round_up(B, 8))
    Bp = _round_up(B, tb)
    if Bp != B:
        x = jnp.pad(x, ((0, Bp - B), (0, 0)))
    grid = (Bp // tb,)

    const_map = lambda i: (0, 0)
    in_specs = [pl.BlockSpec((tb, 6), lambda i: (i, 0))]          # streamed per step
    in_specs += [pl.BlockSpec(w.shape, const_map) for w in weights]  # VMEM-resident
    in_specs += [pl.BlockSpec((1, _BIAS_LEN), const_map)]            # VMEM-resident
    out_spec = pl.BlockSpec((tb, 128), lambda i: (i, 0))             # lane-dense slab

    flops = 2 * Bp * (6 * 256 + 256 * 128 + 128 * 64 + 64 * 32 + 32 * 128)
    weight_bytes = sum(int(math.prod(w.shape)) * 2 for w in weights)
    bytes_accessed = Bp * (6 * 4 + 128 * 4) + weight_bytes + _BIAS_LEN * 4

    out = pl.pallas_call(
        dino_mlp_kernel,
        out_shape=jax.ShapeDtypeStruct((Bp, 128), jnp.float32),
        grid=grid,
        in_specs=in_specs,
        out_specs=out_spec,
        compiler_params=pltpu.CompilerParams(
            dimension_semantics=("parallel",),  # megacore batch sharding on v7x
        ),
        cost_estimate=pl.CostEstimate(
            flops=flops, transcendentals=0, bytes_accessed=bytes_accessed),
    )(x, *weights, bias)

    return out[:B, :3]


def init_params(key):
    """Deterministic init matching nn.Linear (uniform +/- 1/sqrt(fan_in)).

    Weights are stored transposed vs PyTorch ([in, out] instead of [out, in]) so the
    kernel computes x @ W directly.
    """
    dims = [(6, 256), (256, 128), (128, 64), (64, 32), (32, 3)]
    params = []
    for fan_in, fan_out in dims:
        key, kw, kb = jax.random.split(key, 3)
        bound = 1.0 / (fan_in ** 0.5)
        w = jax.random.uniform(kw, (fan_in, fan_out), jnp.float32,
                               minval=-bound, maxval=bound)
        b = jax.random.uniform(kb, (1, fan_out), jnp.float32,
                               minval=-bound, maxval=bound)
        params.append((w, b))
    return params


def reference_forward(x, params):
    """Plain-JAX reference mimicking the kernel numerics (bf16 operands, f32 acc)."""
    h = x
    n = len(params)
    for i, (w, b) in enumerate(params):
        h = jnp.dot(h.astype(jnp.bfloat16), w.astype(jnp.bfloat16),
                    preferred_element_type=jnp.float32) + b
        if i < n - 1:
            h = jnp.maximum(h, 0.0)
    return h


if __name__ == "__main__":
    key = jax.random.PRNGKey(0)
    key, kx = jax.random.split(key)

    B = 64  # small demo batch (production callers should batch >= 256 rows per call)
    x = jax.random.normal(kx, (B, 6), jnp.float32)

    params = init_params(key)
    kernel_params = prepare_params(params)

    fwd = jax.jit(dino_model_forward, static_argnames=("tile_b",))
    out = jax.block_until_ready(fwd(x, kernel_params, tile_b=512))

    ref = reference_forward(x, params)
    assert out.shape == (B, 3), out.shape
    assert jnp.allclose(out, ref, atol=2e-3, rtol=2e-3), "mismatch vs reference"

    print("KERNEL_OK")
</pallas_src>

<mosaic_0001>
module attributes {stable_mosaic.version = 11 : i64} {
  func.func @dino_mlp_kernel(%arg0: i32, %arg1: memref<64x6xf32, #tpu.memory_space<vmem>>, %arg2: memref<6x256xbf16, #tpu.memory_space<vmem>>, %arg3: memref<256x128xbf16, #tpu.memory_space<vmem>>, %arg4: memref<128x64xbf16, #tpu.memory_space<vmem>>, %arg5: memref<64x32xbf16, #tpu.memory_space<vmem>>, %arg6: memref<32x128xbf16, #tpu.memory_space<vmem>>, %arg7: memref<1x768xf32, #tpu.memory_space<vmem>>, %arg8: memref<64x128xf32, #tpu.memory_space<vmem>>) attributes {dimension_semantics = [#tpu.dimension_semantics<parallel>], iteration_bounds = array<i64: 1>, scalar_prefetch = 0 : i64, scratch_operands = 0 : i64, tpu.core_type = #tpu.core_type<tc>, window_params = [{transform_indices = @transform_0, window_bounds = array<i64: 64, 6>}, {pipeline_mode = #tpu.pipeline_mode<synchronous>, transform_indices = @transform_1, window_bounds = array<i64: 6, 256>}, {pipeline_mode = #tpu.pipeline_mode<synchronous>, transform_indices = @transform_2, window_bounds = array<i64: 256, 128>}, {pipeline_mode = #tpu.pipeline_mode<synchronous>, transform_indices = @transform_3, window_bounds = array<i64: 128, 64>}, {pipeline_mode = #tpu.pipeline_mode<synchronous>, transform_indices = @transform_4, window_bounds = array<i64: 64, 32>}, {pipeline_mode = #tpu.pipeline_mode<synchronous>, transform_indices = @transform_5, window_bounds = array<i64: 32, 128>}, {pipeline_mode = #tpu.pipeline_mode<synchronous>, transform_indices = @transform_6, window_bounds = array<i64: 1, 768>}, {transform_indices = @transform_7, window_bounds = array<i64: 64, 128>}]} {
    %c0 = arith.constant 0 : index
    %c0_0 = arith.constant 0 : index
    %0 = vector.load %arg1[%c0, %c0_0] : memref<64x6xf32, #tpu.memory_space<vmem>>, vector<64x6xf32>
    %1 = arith.truncf %0 : vector<64x6xf32> to vector<64x6xbf16>
    %c0_1 = arith.constant 0 : index
    %c0_2 = arith.constant 0 : index
    %2 = vector.load %arg2[%c0_1, %c0_2] : memref<6x256xbf16, #tpu.memory_space<vmem>>, vector<6x256xbf16>
    %cst = arith.constant dense<0.000000e+00> : vector<64x256xf32>
    %3 = tpu.matmul %1, %2, %cst {dimension_numbers = #tpu.dot_dimension_numbers<[1], [0], [0], [1], [0, 0, 1, 1], [], []>} : vector<64x6xbf16>, vector<6x256xbf16>, vector<64x256xf32> -> vector<64x256xf32>
    %c0_3 = arith.constant 0 : index
    %c0_4 = arith.constant 0 : index
    %4 = vector.load %arg7[%c0_3, %c0_4] : memref<1x768xf32, #tpu.memory_space<vmem>>, vector<1x256xf32>
    %5 = vector.broadcast %4 : vector<1x256xf32> to vector<64x256xf32>
    %6 = arith.addf %3, %5 : vector<64x256xf32>
    %cst_5 = arith.constant 0.000000e+00 : f32
    %7 = vector.broadcast %cst_5 : f32 to vector<64x256xf32>
    %8 = arith.maximumf %6, %7 : vector<64x256xf32>
    %9 = arith.truncf %8 : vector<64x256xf32> to vector<64x256xbf16>
    %c0_6 = arith.constant 0 : index
    %c0_7 = arith.constant 0 : index
    %10 = vector.load %arg3[%c0_6, %c0_7] : memref<256x128xbf16, #tpu.memory_space<vmem>>, vector<256x128xbf16>
    %cst_8 = arith.constant dense<0.000000e+00> : vector<64x128xf32>
    %11 = tpu.matmul %9, %10, %cst_8 {dimension_numbers = #tpu.dot_dimension_numbers<[1], [0], [0], [1], [0, 0, 1, 1], [], []>} : vector<64x256xbf16>, vector<256x128xbf16>, vector<64x128xf32> -> vector<64x128xf32>
    %c0_9 = arith.constant 0 : index
    %c256 = arith.constant 256 : index
    %12 = vector.load %arg7[%c0_9, %c256] : memref<1x768xf32, #tpu.memory_space<vmem>>, vector<1x128xf32>
    %13 = vector.broadcast %12 : vector<1x128xf32> to vector<64x128xf32>
    %14 = arith.addf %11, %13 : vector<64x128xf32>
    %cst_10 = arith.constant 0.000000e+00 : f32
    %15 = vector.broadcast %cst_10 : f32 to vector<64x128xf32>
    %16 = arith.maximumf %14, %15 : vector<64x128xf32>
    %17 = arith.truncf %16 : vector<64x128xf32> to vector<64x128xbf16>
    %c0_11 = arith.constant 0 : index
    %c0_12 = arith.constant 0 : index
    %18 = vector.load %arg4[%c0_11, %c0_12] : memref<128x64xbf16, #tpu.memory_space<vmem>>, vector<128x64xbf16>
    %cst_13 = arith.constant dense<0.000000e+00> : vector<64x64xf32>
    %19 = tpu.matmul %17, %18, %cst_13 {dimension_numbers = #tpu.dot_dimension_numbers<[1], [0], [0], [1], [0, 0, 1, 1], [], []>} : vector<64x128xbf16>, vector<128x64xbf16>, vector<64x64xf32> -> vector<64x64xf32>
    %c0_14 = arith.constant 0 : index
    %c384 = arith.constant 384 : index
    %20 = vector.load %arg7[%c0_14, %c384] : memref<1x768xf32, #tpu.memory_space<vmem>>, vector<1x64xf32>
    %21 = vector.broadcast %20 : vector<1x64xf32> to vector<64x64xf32>
    %22 = arith.addf %19, %21 : vector<64x64xf32>
    %cst_15 = arith.constant 0.000000e+00 : f32
    %23 = vector.broadcast %cst_15 : f32 to vector<64x64xf32>
    %24 = arith.maximumf %22, %23 : vector<64x64xf32>
    %25 = arith.truncf %24 : vector<64x64xf32> to vector<64x64xbf16>
    %c0_16 = arith.constant 0 : index
    %c0_17 = arith.constant 0 : index
    %26 = vector.load %arg5[%c0_16, %c0_17] : memref<64x32xbf16, #tpu.memory_space<vmem>>, vector<64x32xbf16>
    %cst_18 = arith.constant dense<0.000000e+00> : vector<64x32xf32>
    %27 = tpu.matmul %25, %26, %cst_18 {dimension_numbers = #tpu.dot_dimension_numbers<[1], [0], [0], [1], [0, 0, 1, 1], [], []>} : vector<64x64xbf16>, vector<64x32xbf16>, vector<64x32xf32> -> vector<64x32xf32>
    %c0_19 = arith.constant 0 : index
    %c512 = arith.constant 512 : index
    %28 = vector.load %arg7[%c0_19, %c512] : memref<1x768xf32, #tpu.memory_space<vmem>>, vector<1x32xf32>
    %29 = vector.broadcast %28 : vector<1x32xf32> to vector<64x32xf32>
    %30 = arith.addf %27, %29 : vector<64x32xf32>
    %cst_20 = arith.constant 0.000000e+00 : f32
    %31 = vector.broadcast %cst_20 : f32 to vector<64x32xf32>
    %32 = arith.maximumf %30, %31 : vector<64x32xf32>
    %33 = arith.truncf %32 : vector<64x32xf32> to vector<64x32xbf16>
    %c0_21 = arith.constant 0 : index
    %c0_22 = arith.constant 0 : index
    %34 = vector.load %arg6[%c0_21, %c0_22] : memref<32x128xbf16, #tpu.memory_space<vmem>>, vector<32x128xbf16>
    %cst_23 = arith.constant dense<0.000000e+00> : vector<64x128xf32>
    %35 = tpu.matmul %33, %34, %cst_23 {dimension_numbers = #tpu.dot_dimension_numbers<[1], [0], [0], [1], [0, 0, 1, 1], [], []>} : vector<64x32xbf16>, vector<32x128xbf16>, vector<64x128xf32> -> vector<64x128xf32>
    %c0_24 = arith.constant 0 : index
    %c640 = arith.constant 640 : index
    %36 = vector.load %arg7[%c0_24, %c640] : memref<1x768xf32, #tpu.memory_space<vmem>>, vector<1x128xf32>
    %37 = vector.broadcast %36 : vector<1x128xf32> to vector<64x128xf32>
    %38 = arith.addf %35, %37 : vector<64x128xf32>
    %c0_25 = arith.constant 0 : index
    %c0_26 = arith.constant 0 : index
    %39 = vector.load %arg8[%c0_25, %c0_26] : memref<64x128xf32, #tpu.memory_space<vmem>>, vector<64x128xf32>
    tpu.vector_store %arg8[%c0_25, %c0_26], %38 {strides = array<i32>} : memref<64x128xf32, #tpu.memory_space<vmem>>, vector<64x128xf32>,
    return
  }
  func.func @transform_0(%arg0: i32) -> (i32, i32) {
    %c0_i32 = arith.constant 0 : i32
    %c0_i32_0 = arith.constant 0 : i32
    return %arg0, %c0_i32 : i32, i32
  }
  func.func @transform_1(%arg0: i32) -> (i32, i32) {
    %c0_i32 = arith.constant 0 : i32
    %c0_i32_0 = arith.constant 0 : i32
    %c0_i32_1 = arith.constant 0 : i32
    return %c0_i32, %c0_i32_0 : i32, i32
  }
  func.func @transform_2(%arg0: i32) -> (i32, i32) {
    %c0_i32 = arith.constant 0 : i32
    %c0_i32_0 = arith.constant 0 : i32
    %c0_i32_1 = arith.constant 0 : i32
    return %c0_i32, %c0_i32_0 : i32, i32
  }
  func.func @transform_3(%arg0: i32) -> (i32, i32) {
    %c0_i32 = arith.constant 0 : i32
    %c0_i32_0 = arith.constant 0 : i32
    %c0_i32_1 = arith.constant 0 : i32
    return %c0_i32, %c0_i32_0 : i32, i32
  }
  func.func @transform_4(%arg0: i32) -> (i32, i32) {
    %c0_i32 = arith.constant 0 : i32
    %c0_i32_0 = arith.constant 0 : i32
    %c0_i32_1 = arith.constant 0 : i32
    return %c0_i32, %c0_i32_0 : i32, i32
  }
  func.func @transform_5(%arg0: i32) -> (i32, i32) {
    %c0_i32 = arith.constant 0 : i32
    %c0_i32_0 = arith.constant 0 : i32
    %c0_i32_1 = arith.constant 0 : i32
    return %c0_i32, %c0_i32_0 : i32, i32
  }
  func.func @transform_6(%arg0: i32) -> (i32, i32) {
    %c0_i32 = arith.constant 0 : i32
    %c0_i32_0 = arith.constant 0 : i32
    %c0_i32_1 = arith.constant 0 : i32
    return %c0_i32, %c0_i32_0 : i32, i32
  }
  func.func @transform_7(%arg0: i32) -> (i32, i32) {
    %c0_i32 = arith.constant 0 : i32
    %c0_i32_0 = arith.constant 0 : i32
    return %arg0, %c0_i32 : i32, i32
  }
}

</mosaic_0001>

<bundles_post_ra>
// kernel: dino_model_forward.1
= control target key start
LH: loop header
LB: loop body
LE: loop exit
PB: predicated region body
PF: predicated region fallthrough
CT: control target
= control target key end

     0   :  { %vm64_vm0 = vcmask 1042432   ;;  %vm51_vm1 = vcmask 48128   ;;  %vm500_vm2 = vcmask 523264   ;;  %vm574_vm3 = vcmask 261120   ;;  %s1018_s1 = inlined_call_operand.vmem [shape: bf16[6,256], index: 1, kind: input, shape index: {}]   ;;  %s1019_s0 = inlined_call_operand.vmem [shape: f32[64,6], index: 0, kind: input, shape index: {}]   ;;  %s1020_s6 = inlined_call_operand.vmem [shape: f32[1,768], index: 6, kind: input, shape index: {}]   ;;  %s1021_s2 = inlined_call_operand.vmem [shape: bf16[256,128], index: 2, kind: input, shape index: {}]   ;;  %s1022_s3 = inlined_call_operand.vmem [shape: bf16[128,64], index: 3, kind: input, shape index: {}]   ;;  %s1023_s4 = inlined_call_operand.vmem [shape: bf16[64,32], index: 4, kind: input, shape index: {}]   ;;  %s1024_s5 = inlined_call_operand.vmem [shape: bf16[32,128], index: 5, kind: input, shape index: {}]   ;;  %s1025_s7 = inlined_call_operand.vmem [shape: f32[64,128], index: 7, kind: output, shape index: {}]  }
   0x1   :  { %v39_v0 = vld [vmem:[%s1018_s1] sm:$0x77]  ;;  %v28_v3 = vld [vmem:[%s1019_s0 + $0x8] sm:$0xff]  ;;  %v29_v7 = vld [vmem:[%s1019_s0 + $0x10] sm:$0xff] }
   0x2   :  { %v47_v1 = vunpack.c.l.b16 %v39_v0  ;;  %v27_v2 = vld [vmem:[%s1019_s0] sm:$0xff]  ;;  %v30_v8 = vld [vmem:[%s1019_s0 + $0x18] sm:$0xff]  ;;  %v48_v10 = vunpack.c.h.b16 %v39_v0  ;;  %v32_v14 = vld [vmem:[%s1019_s0 + $0x28] sm:$0xff] }
   0x3   :  { %v35_v6 = vpack.c.bf16 %v28_v3, %v27_v2  ;;  %v36_v9 = vpack.c.bf16 %v30_v8, %v29_v7  ;;  %v31_v13 = vld [vmem:[%s1019_s0 + $0x20] sm:$0xff]  ;;  %v771_v16 = vld [vmem:[%s1021_s2 + $0x38] sm:$0xff]  ;;  %v33_v17 = vld [vmem:[%s1019_s0 + $0x30] sm:$0xff] }
   0x4   :  { %v49_v4 = vpack.c.b16 %v47_v1, %v47_v1  ;;  %v50_v11 = vpack.c.b16 %v48_v10, %v48_v10  ;;  %v37_v15 = vpack.c.bf16 %v32_v14, %v31_v13  ;;  %v34_v18 = vld [vmem:[%s1019_s0 + $0x38] sm:$0xff]  ;;  %285 = vmatpush.bf16.msra.mxu2 %v771_v16  ;;  %v770_v19 = vld [vmem:[%s1021_s2 + $0x30] sm:$0xff]  ;;  %794 = vmatpush.bf16.msra.mxu3 %v771_v16  ;;  %v769_v21 = vld [vmem:[%s1021_s2 + $0x28] sm:$0xff] }
   0x5   :  { %v38_v20 = vpack.c.bf16 %v34_v18, %v33_v17  ;;  %v768_v22 = vld [vmem:[%s1021_s2 + $0x20] sm:$0xff]  ;;  %v767_v23 = vld [vmem:[%s1021_s2 + $0x18] sm:$0xff]  ;;  %v766_v24 = vld [vmem:[%s1021_s2 + $0x10] sm:$0xff] }
   0x6   :  { %v66_v5 = vsel %vm64_vm0, %v49_v4, 0  ;;  %v69_v12 = vsel %vm64_vm0, %v50_v11, 0  ;;  %v765_v25 = vld [vmem:[%s1021_s2 + $0x8] sm:$0xff]  ;;  %v764_v26 = vld [vmem:[%s1021_s2] sm:$0xff]  ;;  %v779_v36 = vld [vmem:[%s1021_s2 + $0x78] sm:$0xff] }
   0x7   :  { %78 = vmatpush.bf16.msra.mxu0 %v66_v5  ;;  %107 = vmatpush.bf16.msra.mxu1 %v69_v12  ;;  %v40_v27 = vld [vmem:[%s1020_s6] sm:$0x3]  ;;  %v778_v38 = vld [vmem:[%s1021_s2 + $0x70] sm:$0xff]  ;;  %v777_v39 = vld [vmem:[%s1021_s2 + $0x68] sm:$0xff] }
   0x8   :  { %286 = vmatpush.bf16.msra.mxu2 %v770_v19  ;;  %795 = vmatpush.bf16.msra.mxu3 %v770_v19  ;;  %v42_v29 = vperm.slane %v40_v27, 0  ;;  %v776_v43 = vld [vmem:[%s1021_s2 + $0x60] sm:$0xff]  ;;  %v775_v47 = vld [vmem:[%s1021_s2 + $0x58] sm:$0xff]  ;;  %v774_v49 = vld [vmem:[%s1021_s2 + $0x50] sm:$0xff]  ;;  %v43_v4 = vperm.slane %v40_v27, 1 }
   0x9   :  { %v773_v50 = vld [vmem:[%s1021_s2 + $0x48] sm:$0xff]  ;;  %v772_v53 = vld [vmem:[%s1021_s2 + $0x40] sm:$0xff] }
   0xa   :  { %628 = vmatmul.msk.bf16.vlgmr.msra.gmra.mxu0 %vm51_vm1, %v35_v6  ;;  %632 = vmatmul.msk.bf16.vlgmr.msra.gmra.mxu1 %vm51_vm1, %v35_v6 }
   0xc   :  { %287 = vmatpush.bf16.msra.mxu2 %v769_v21  ;;  %796 = vmatpush.bf16.msra.mxu3 %v769_v21 }
  0x10   :  { %288 = vmatpush.bf16.msra.mxu2 %v768_v22  ;;  %797 = vmatpush.bf16.msra.mxu3 %v768_v22 }
  0x14   :  { %289 = vmatpush.bf16.msra.mxu2 %v767_v23  ;;  %798 = vmatpush.bf16.msra.mxu3 %v767_v23 }
  0x18   :  { %290 = vmatpush.bf16.msra.mxu2 %v766_v24  ;;  %799 = vmatpush.bf16.msra.mxu3 %v766_v24 }
  0x1a   :  { %629 = vmatmul.msk.bf16.gmra.mxu0 %vm51_vm1, %v36_v9  ;;  %633 = vmatmul.msk.bf16.gmra.mxu1 %vm51_vm1, %v36_v9 }
  0x1c   :  { %291 = vmatpush.bf16.msra.mxu2 %v765_v25  ;;  %800 = vmatpush.bf16.msra.mxu3 %v765_v25 }
  0x20   :  { %292 = vmatpush.bf16.msra.mxu2 %v764_v26  ;;  %801 = vmatpush.bf16.msra.mxu3 %v764_v26 }
  0x24   :  { %314 = vmatpush.bf16.msrb.mxu3 %v779_v36  ;;  %v781_v36 = vld [vmem:[%s1022_s3 + $0x8] sm:$0xff] }
  0x28   :  { %315 = vmatpush.bf16.msrb.mxu3 %v778_v38  ;;  %v780_v38 = vld [vmem:[%s1022_s3] sm:$0xff] }
  0x2a   :  { %630 = vmatmul.msk.bf16.gmra.mxu0 %vm51_vm1, %v37_v15  ;;  %634 = vmatmul.msk.bf16.gmra.mxu1 %vm51_vm1, %v37_v15 }
  0x2c   :  { %316 = vmatpush.bf16.msrb.mxu3 %v777_v39 }
  0x30   :  { %317 = vmatpush.bf16.msrb.mxu3 %v776_v43 }
  0x34   :  { %318 = vmatpush.bf16.msrb.mxu3 %v775_v47 }
  0x38   :  { %319 = vmatpush.bf16.msrb.mxu3 %v774_v49 }
  0x3a   :  { %631 = vmatmul.msk.bf16.gmra.mxu0 %vm51_vm1, %v38_v20  ;;  %635 = vmatmul.msk.bf16.gmra.mxu1 %vm51_vm1, %v38_v20 }
  0x3c   :  { %320 = vmatpush.bf16.msrb.mxu3 %v773_v50 }
  0x40   :  { %321 = vmatpush.bf16.msrb.mxu3 %v772_v53 }
  0x87   :  { %v80_v28 = vpop.f32.mrf.mxu0  ;;  %v109_v57 = vpop.f32.mrf.mxu1 }
  0x88   :  { %v81_v30 = vadd.f32 %v80_v28, %v42_v29  ;;  %v110_v5 = vadd.f32 %v109_v57, %v43_v4 }
  0x8a   :  { %v129_v33 = vmax.f32 %v81_v30, 0.0  ;;  %v130_v7 = vmax.f32 %v110_v5, 0.0  ;;  %v789_v5 = vld [vmem:[%s1023_s4 + $0x8] sm:$0xff] }
  0x8f   :  { %v82_v31 = vpop.f32.mrf.mxu0  ;;  %v111_v60 = vpop.f32.mrf.mxu1 }
  0x90   :  { %v83_v32 = vadd.f32 %v82_v31, %v42_v29  ;;  %v112_v6 = vadd.f32 %v111_v60, %v43_v4  ;;  %v786_v31 = vld [vmem:[%s1022_s3 + $0x30] sm:$0xff] }
  0x92   :  { %v131_v34 = vmax.f32 %v83_v32, 0.0  ;;  %v132_v8 = vmax.f32 %v112_v6, 0.0  ;;  %v785_v32 = vld [vmem:[%s1022_s3 + $0x28] sm:$0xff] }
  0x94   :  { %v145_v35 = vpack.c.bf16 %v131_v34, %v129_v33  ;;  %v146_v10 = vpack.c.bf16 %v132_v8, %v130_v7  ;;  %v784_v33 = vld [vmem:[%s1022_s3 + $0x20] sm:$0xff]  ;;  %v783_v34 = vld [vmem:[%s1022_s3 + $0x18] sm:$0xff] }
  0x96   :  { %293 = vmatmul.bf16.vlgmr.msra.gmra.mxu2 %v145_v35  ;;  %v782_v35 = vld [vmem:[%s1022_s3 + $0x10] sm:$0xff] }
  0x97   :  { %v85_v37 = vpop.f32.mrf.mxu0  ;;  %v114_v3 = vpop.f32.mrf.mxu1 }
  0x98   :  { %v86_v40 = vadd.f32 %v85_v37, %v42_v29  ;;  %v115_v12 = vadd.f32 %v114_v3, %v43_v4  ;;  %v790_v3 = vld [vmem:[%s1023_s4 + $0x10] sm:$0xff] }
  0x9a   :  { %v133_v44 = vmax.f32 %v86_v40, 0.0  ;;  %v134_v14 = vmax.f32 %v115_v12, 0.0 }
  0x9f   :  { %v87_v41 = vpop.f32.mrf.mxu0  ;;  %v116_v9 = vpop.f32.mrf.mxu1 }
  0xa0   :  { %v88_v42 = vadd.f32 %v87_v41, %v42_v29  ;;  %v117_v13 = vadd.f32 %v116_v9, %v43_v4 }
  0xa2   :  { %v135_v45 = vmax.f32 %v88_v42, 0.0  ;;  %v136_v15 = vmax.f32 %v117_v13, 0.0 }
  0xa4   :  { %v147_v46 = vpack.c.bf16 %v135_v45, %v133_v44  ;;  %v148_v16 = vpack.c.bf16 %v136_v15, %v134_v14  ;;  %v802_v45 = vld [vmem:[%s1020_s6 + $0x2] ss:$0 sm:$0xff] }
  0xa6   :  { %298 = vmatmul.bf16.gmra.mxu2 %v147_v46 }
  0xa7   :  { %v90_v48 = vpop.f32.mrf.mxu0  ;;  %v119_v11 = vpop.f32.mrf.mxu1 }
  0xa8   :  { %v91_v51 = vadd.f32 %v90_v48, %v42_v29  ;;  %v120_v18 = vadd.f32 %v119_v11, %v43_v4 }
  0xaa   :  { %v137_v55 = vmax.f32 %v91_v51, 0.0  ;;  %v138_v21 = vmax.f32 %v120_v18, 0.0 }
  0xaf   :  { %v92_v52 = vpop.f32.mrf.mxu0  ;;  %v121_v17 = vpop.f32.mrf.mxu1 }
  0xb0   :  { %v93_v54 = vadd.f32 %v92_v52, %v42_v29  ;;  %v122_v19 = vadd.f32 %v121_v17, %v43_v4 }
  0xb2   :  { %v139_v56 = vmax.f32 %v93_v54, 0.0  ;;  %v140_v22 = vmax.f32 %v122_v19, 0.0 }
  0xb4   :  { %v149_v58 = vpack.c.bf16 %v139_v56, %v137_v55  ;;  %v150_v23 = vpack.c.bf16 %v140_v22, %v138_v21 }
  0xb6   :  { %303 = vmatmul.bf16.vlgmr.msra.gmra.mxu3 %v149_v58 }
  0xb7   :  { %v95_v59 = vpop.f32.mrf.mxu0  ;;  %v124_v20 = vpop.f32.mrf.mxu1 }
  0xb8   :  { %v96_v61 = vadd.f32 %v95_v59, %v42_v29  ;;  %v125_v25 = vadd.f32 %v124_v20, %v43_v4 }
  0xba   :  { %v141_v0 = vmax.f32 %v96_v61, 0.0  ;;  %v142_v27 = vmax.f32 %v125_v25, 0.0 }
  0xbf   :  { %v97_v62 = vpop.f32.mrf.mxu0  ;;  %v126_v24 = vpop.f32.mrf.mxu1 }
  0xc0   :  { %v98_v63 = vadd.f32 %v97_v62, %v42_v29  ;;  %v127_v26 = vadd.f32 %v126_v24, %v43_v4  ;;  %v787_v29 = vld [vmem:[%s1022_s3 + $0x38] sm:$0xff]  ;;  %v803_v24 = vld [vmem:[%s1020_s6 + $0x3] ss:$0 sm:$0xff] }
  0xc1   :  { %423 = vmatpush.bf16.msrb.mxu0 %v787_v29 }
  0xc2   :  { %v143_v1 = vmax.f32 %v98_v63, 0.0  ;;  %v144_v28 = vmax.f32 %v127_v26, 0.0 }
  0xc4   :  { %v151_v2 = vpack.c.bf16 %v143_v1, %v141_v0  ;;  %v152_v30 = vpack.c.bf16 %v144_v28, %v142_v27  ;;  %v791_v1 = vld [vmem:[%s1023_s4 + $0x18] sm:$0xff] }
  0xc5   :  { %424 = vmatpush.bf16.msrb.mxu0 %v786_v31  ;;  %517 = vmatpush.bf16.msrb.mxu1 %v791_v1 }
  0xc6   :  { %308 = vmatmul.bf16.gmra.mxu3 %v151_v2 }
  0xc9   :  { %425 = vmatpush.bf16.msrb.mxu0 %v785_v32  ;;  %518 = vmatpush.bf16.msrb.mxu1 %v790_v3 }
  0xcd   :  { %426 = vmatpush.bf16.msrb.mxu0 %v784_v33  ;;  %519 = vmatpush.bf16.msrb.mxu1 %v789_v5 }
  0xd1   :  { %427 = vmatpush.bf16.msrb.mxu0 %v783_v34 }
  0xd5   :  { %428 = vmatpush.bf16.msrb.mxu0 %v782_v35 }
  0xd6   :  { %322 = vmatmul.bf16.vlgmr.msrb.gmra.mxu3 %v146_v10  ;;  %v788_v10 = vld [vmem:[%s1023_s4] sm:$0xff] }
  0xd7   :  { %520 = vmatpush.bf16.msrb.mxu1 %v788_v10 }
  0xd9   :  { %429 = vmatpush.bf16.msrb.mxu0 %v781_v36 }
  0xdd   :  { %430 = vmatpush.bf16.msrb.mxu0 %v780_v38  ;;  %v793_v38 = vld [vmem:[%s1024_s5 + $0x8] sm:$0xff] }
  0xde   :  { %593 = vmatpush.bf16.msrb.mxu2 %v793_v38 }
  0xe6   :  { %327 = vmatmul.bf16.gmra.mxu3 %v148_v16 }
  0xf6   :  { %332 = vmatmul.bf16.gmra.mxu3 %v150_v23 }
 0x106   :  { %337 = vmatmul.bf16.gmra.mxu3 %v152_v30 }
 0x119   :  { %v294_v41 = vpop.f32.mrf.mxu2 }
 0x11a   :  { %v295_v46 = vadd.f32 %v802_v45, %v294_v41 }
 0x121   :  { %v296_v43 = vpop.f32.mrf.mxu2 }
 0x122   :  { %v297_v47 = vadd.f32 %v802_v45, %v296_v43 }
 0x129   :  { %v299_v51 = vpop.f32.mrf.mxu2 }
 0x12a   :  { %v300_v57 = vadd.f32 %v802_v45, %v299_v51 }
 0x131   :  { %v301_v56 = vpop.f32.mrf.mxu2 }
 0x132   :  { %v302_v58 = vadd.f32 %v802_v45, %v301_v56 }
 0x139   :  { %v304_v37 = vpop.f32.mrf.mxu3 }
 0x13a   :  { %v305_v4 = vadd.f32 %v802_v45, %v304_v37 }
 0x141   :  { %v306_v39 = vpop.f32.mrf.mxu3 }
 0x142   :  { %v307_v6 = vadd.f32 %v802_v45, %v306_v39 }
 0x149   :  { %v309_v40 = vpop.f32.mrf.mxu3 }
 0x14a   :  { %v310_v15 = vadd.f32 %v802_v45, %v309_v40  ;;  %v792_v40 = vld [vmem:[%s1024_s5] sm:$0xff] }
 0x14b   :  { %594 = vmatpush.bf16.msrb.mxu2 %v792_v40 }
 0x151   :  { %v311_v42 = vpop.f32.mrf.mxu3 }
 0x152   :  { %v312_v16 = vadd.f32 %v802_v45, %v311_v42 }
 0x159   :  { %v323_v44 = vpop.f32.mrf.mxu3 }
 0x15a   :  { %v324_v48 = vadd.f32 %v323_v44, %v295_v46 }
 0x15c   :  { %v343_v52 = vmax.f32 %v324_v48, 0.0 }
 0x161   :  { %v325_v49 = vpop.f32.mrf.mxu3 }
 0x162   :  { %v326_v50 = vadd.f32 %v325_v49, %v297_v47 }
 0x164   :  { %v344_v53 = vmax.f32 %v326_v50, 0.0 }
 0x166   :  { %v351_v54 = vpack.c.bf16 %v344_v53, %v343_v52 }
 0x168   :  { %431 = vmatmul.bf16.vlgmr.msrb.gmra.mxu0 %v351_v54 }
 0x169   :  { %v328_v55 = vpop.f32.mrf.mxu3 }
 0x16a   :  { %v329_v59 = vadd.f32 %v328_v55, %v300_v57  ;;  %v804_v55 = vld [vmem:[%s1020_s6 + $0x4] ss:$0 sm:$0xff] }
 0x16c   :  { %v345_v62 = vmax.f32 %v329_v59, 0.0 }
 0x171   :  { %v330_v60 = vpop.f32.mrf.mxu3 }
 0x172   :  { %v331_v61 = vadd.f32 %v330_v60, %v302_v58 }
 0x174   :  { %v346_v63 = vmax.f32 %v331_v61, 0.0 }
 0x176   :  { %v352_v0 = vpack.c.bf16 %v346_v63, %v345_v62 }
 0x178   :  { %436 = vmatmul.bf16.gmra.mxu0 %v352_v0 }
 0x179   :  { %v333_v2 = vpop.f32.mrf.mxu3 }
 0x17a   :  { %v334_v7 = vadd.f32 %v333_v2, %v305_v4 }
 0x17c   :  { %v347_v11 = vmax.f32 %v334_v7, 0.0 }
 0x181   :  { %v335_v8 = vpop.f32.mrf.mxu3 }
 0x182   :  { %v336_v9 = vadd.f32 %v335_v8, %v307_v6 }
 0x184   :  { %v348_v12 = vmax.f32 %v336_v9, 0.0 }
 0x186   :  { %v353_v13 = vpack.c.bf16 %v348_v12, %v347_v11 }
 0x188   :  { %441 = vmatmul.bf16.gmra.mxu0 %v353_v13 }
 0x189   :  { %v338_v14 = vpop.f32.mrf.mxu3 }
 0x18a   :  { %v339_v17 = vadd.f32 %v338_v14, %v310_v15 }
 0x18c   :  { %v349_v20 = vmax.f32 %v339_v17, 0.0 }
 0x191   :  { %v340_v18 = vpop.f32.mrf.mxu3 }
 0x192   :  { %v341_v19 = vadd.f32 %v340_v18, %v312_v16 }
 0x194   :  { %v350_v21 = vmax.f32 %v341_v19, 0.0  ;;  %v805_v19 = vld [vmem:[%s1020_s6 + $0x5] ss:$0 sm:$0xff] }
 0x196   :  { %v354_v22 = vpack.c.bf16 %v350_v21, %v349_v20 }
 0x198   :  { %446 = vmatmul.bf16.gmra.mxu0 %v354_v22 }
 0x1e5   :  { %v432_v23 = vpop.f32.mrf.mxu0 }
 0x1e6   :  { %v433_v25 = vadd.f32 %v803_v24, %v432_v23 }
 0x1e8   :  { %v452_v28 = vmax.f32 %v433_v25, 0.0 }
 0x1ed   :  { %v434_v26 = vpop.f32.mrf.mxu0 }
 0x1ee   :  { %v435_v27 = vadd.f32 %v803_v24, %v434_v26 }
 0x1f0   :  { %v453_v29 = vmax.f32 %v435_v27, 0.0 }
 0x1f2   :  { %v460_v30 = vpack.c.bf16 %v453_v29, %v452_v28 }
 0x1f4   :  { %748 = vmatmul.msk.bf16.vlgmr.msrb.gmra.mxu1 %vm500_vm2, %v460_v30 }
 0x1f5   :  { %v437_v31 = vpop.f32.mrf.mxu0 }
 0x1f6   :  { %v438_v32 = vadd.f32 %v803_v24, %v437_v31 }
 0x1f8   :  { %v454_v35 = vmax.f32 %v438_v32, 0.0 }
 0x1fd   :  { %v439_v33 = vpop.f32.mrf.mxu0 }
 0x1fe   :  { %v440_v34 = vadd.f32 %v803_v24, %v439_v33 }
 0x200   :  { %v455_v36 = vmax.f32 %v440_v34, 0.0 }
 0x202   :  { %v461_v37 = vpack.c.bf16 %v455_v36, %v454_v35 }
 0x204   :  { %749 = vmatmul.msk.bf16.gmra.mxu1 %vm500_vm2, %v461_v37 }
 0x205   :  { %v442_v39 = vpop.f32.mrf.mxu0 }
 0x206   :  { %v443_v41 = vadd.f32 %v803_v24, %v442_v39 }
 0x208   :  { %v456_v44 = vmax.f32 %v443_v41, 0.0 }
 0x20d   :  { %v444_v42 = vpop.f32.mrf.mxu0 }
 0x20e   :  { %v445_v43 = vadd.f32 %v803_v24, %v444_v42 }
 0x210   :  { %v457_v45 = vmax.f32 %v445_v43, 0.0 }
 0x212   :  { %v462_v46 = vpack.c.bf16 %v457_v45, %v456_v44 }
 0x214   :  { %750 = vmatmul.msk.bf16.gmra.mxu1 %vm500_vm2, %v462_v46 }
 0x215   :  { %v447_v47 = vpop.f32.mrf.mxu0 }
 0x216   :  { %v448_v48 = vadd.f32 %v803_v24, %v447_v47 }
 0x218   :  { %v458_v51 = vmax.f32 %v448_v48, 0.0 }
 0x21d   :  { %v449_v49 = vpop.f32.mrf.mxu0 }
 0x21e   :  { %v450_v50 = vadd.f32 %v803_v24, %v449_v49 }
 0x220   :  { %v459_v52 = vmax.f32 %v450_v50, 0.0 }
 0x222   :  { %v463_v53 = vpack.c.bf16 %v459_v52, %v458_v51 }
 0x224   :  { %751 = vmatmul.msk.bf16.gmra.mxu1 %vm500_vm2, %v463_v53 }
 0x271   :  { %v522_v54 = vpop.f32.mrf.mxu1 }
 0x272   :  { %v523_v56 = vadd.f32 %v804_v55, %v522_v54 }
 0x274   :  { %v542_v59 = vmax.f32 %v523_v56, 0.0 }
 0x279   :  { %v524_v57 = vpop.f32.mrf.mxu1 }
 0x27a   :  { %v525_v58 = vadd.f32 %v804_v55, %v524_v57 }
 0x27c   :  { %v543_v60 = vmax.f32 %v525_v58, 0.0 }
 0x27e   :  { %v550_v61 = vpack.c.bf16 %v543_v60, %v542_v59 }
 0x280   :  { %760 = vmatmul.msk.bf16.vlgmr.msrb.gmra.mxu2 %vm574_vm3, %v550_v61 }
 0x281   :  { %v527_v62 = vpop.f32.mrf.mxu1 }
 0x282   :  { %v528_v63 = vadd.f32 %v804_v55, %v527_v62 }
 0x284   :  { %v544_v2 = vmax.f32 %v528_v63, 0.0 }
 0x289   :  { %v529_v0 = vpop.f32.mrf.mxu1 }
 0x28a   :  { %v530_v1 = vadd.f32 %v804_v55, %v529_v0 }
 0x28c   :  { %v545_v3 = vmax.f32 %v530_v1, 0.0 }
 0x28e   :  { %v551_v4 = vpack.c.bf16 %v545_v3, %v544_v2 }
 0x290   :  { %761 = vmatmul.msk.bf16.gmra.mxu2 %vm574_vm3, %v551_v4 }
 0x291   :  { %v532_v5 = vpop.f32.mrf.mxu1 }
 0x292   :  { %v533_v6 = vadd.f32 %v804_v55, %v532_v5 }
 0x294   :  { %v546_v9 = vmax.f32 %v533_v6, 0.0 }
 0x299   :  { %v534_v7 = vpop.f32.mrf.mxu1 }
 0x29a   :  { %v535_v8 = vadd.f32 %v804_v55, %v534_v7 }
 0x29c   :  { %v547_v10 = vmax.f32 %v535_v8, 0.0 }
 0x29e   :  { %v552_v11 = vpack.c.bf16 %v547_v10, %v546_v9 }
 0x2a0   :  { %762 = vmatmul.msk.bf16.gmra.mxu2 %vm574_vm3, %v552_v11 }
 0x2a1   :  { %v537_v12 = vpop.f32.mrf.mxu1 }
 0x2a2   :  { %v538_v13 = vadd.f32 %v804_v55, %v537_v12 }
 0x2a4   :  { %v548_v16 = vmax.f32 %v538_v13, 0.0 }
 0x2a9   :  { %v539_v14 = vpop.f32.mrf.mxu1 }
 0x2aa   :  { %v540_v15 = vadd.f32 %v804_v55, %v539_v14 }
 0x2ac   :  { %v549_v17 = vmax.f32 %v540_v15, 0.0 }
 0x2ae   :  { %v553_v18 = vpack.c.bf16 %v549_v17, %v548_v16 }
 0x2b0   :  { %763 = vmatmul.msk.bf16.gmra.mxu2 %vm574_vm3, %v553_v18 }
 0x303   :  { %v596_v20 = vpop.f32.mrf.mxu2 }
 0x304   :  { %v597_v21 = vadd.f32 %v805_v19, %v596_v20 }
 0x306   :  { %616 = vst [vmem:[%s1025_s7] sm:$0xff] %v597_v21 }
 0x30b   :  { %v598_v22 = vpop.f32.mrf.mxu2 }
 0x30c   :  { %v599_v23 = vadd.f32 %v805_v19, %v598_v22 }
 0x30e   :  { %617 = vst [vmem:[%s1025_s7 + $0x8] sm:$0xff] %v599_v23 }
 0x313   :  { %v601_v24 = vpop.f32.mrf.mxu2 }
 0x314   :  { %v602_v25 = vadd.f32 %v805_v19, %v601_v24 }
 0x316   :  { %618 = vst [vmem:[%s1025_s7 + $0x10] sm:$0xff] %v602_v25 }
 0x31b   :  { %v603_v26 = vpop.f32.mrf.mxu2 }
 0x31c   :  { %v604_v27 = vadd.f32 %v805_v19, %v603_v26 }
 0x31e   :  { %619 = vst [vmem:[%s1025_s7 + $0x18] sm:$0xff] %v604_v27 }
 0x323   :  { %v606_v28 = vpop.f32.mrf.mxu2 }
 0x324   :  { %v607_v29 = vadd.f32 %v805_v19, %v606_v28 }
 0x326   :  { %620 = vst [vmem:[%s1025_s7 + $0x20] sm:$0xff] %v607_v29 }
 0x32b   :  { %v608_v30 = vpop.f32.mrf.mxu2 }
 0x32c   :  { %v609_v31 = vadd.f32 %v805_v19, %v608_v30 }
 0x32e   :  { %621 = vst [vmem:[%s1025_s7 + $0x28] sm:$0xff] %v609_v31 }
 0x333   :  { %v611_v32 = vpop.f32.mrf.mxu2 }
 0x334   :  { %v612_v33 = vadd.f32 %v805_v19, %v611_v32 }
 0x336   :  { %622 = vst [vmem:[%s1025_s7 + $0x30] sm:$0xff] %v612_v33 }
 0x33b   :  { %v613_v34 = vpop.f32.mrf.mxu2 }
 0x33c   :  { %v614_v35 = vadd.f32 %v805_v19, %v613_v34 }
 0x33e   :  { %623 = vst [vmem:[%s1025_s7 + $0x38] sm:$0xff] %v614_v35 }

</bundles_post_ra>
